<compile_context>
chip_gen: v7x
topology: tpu7x:2x2x1
jax: 0.10.0
libtpu: 0.0.40
codegen_flags: <defaults>
</compile_context>

<pallas_src>
import jax
import jax.numpy as jnp
from jax.experimental import pallas as pl
from jax.experimental.pallas import tpu as pltpu

# ---------------- Small deterministic "config" ----------------
VOCAB_WORD_SIZE = 50
NUM_CLASS_ENTITIES = 7
ENTITY_DIM = 12
POSITION_DIM = 8
WINDOW_SIZE = 3
POSITION_VOCAB = 2 * WINDOW_SIZE + 2
KERNEL_SIZES = (2, 3, 4)
NFEATURE_MAPS = 16
NUM_CLASS_EVENTS = 6
MAX_L2NORM = 1.0
WORD_DIM = 300
EMB_DIM = WORD_DIM + ENTITY_DIM + POSITION_DIM          # 320

B = 2
S = 8
KMAX = max(KERNEL_SIZES)
NKS = len(KERNEL_SIZES)
L = S + KMAX - 1              # 11 conv-output rows actually produced (extra rows masked)
L_PAD = 16                    # rows padded to a sublane multiple (power of two)
KE = KMAX * EMB_DIM           # 1280  im2col contraction dim (lane multiple of 128)
NF = NKS * NFEATURE_MAPS      # 48    real conv feature columns
NF_PAD = 128                  # padded conv-feature columns
W_PAD = 384                   # padded word-center width (300 data + 1 bias column + zeros)
C_PAD = 128                   # padded class dim (6 -> 128), sliced outside the kernel
D_IN = NF + WORD_DIM          # 348 = torch classifier in_features
NEG = -1e30
P_ROWS = KE + NF_PAD + W_PAD  # 1792 rows of the packed parameter slab


# ---------------- Pallas kernel ----------------
def cnn_classifier_kernel(x_ref, p_ref, wc_ref, out_ref):
    """x_ref : (B*L_PAD, KE) bf16 im2col slab.
    p_ref : (P_ROWS, 128) bf16 packed params = [conv_w (KE) | w1 (NF_PAD) | w2+bias-row (W_PAD)].
    wc_ref: (B, W_PAD) bf16 word-center; column WORD_DIM is 1.0 and carries the folded bias.
    out_ref: (B, C_PAD) f32 padded logits."""
    # All conv taps / kernel sizes / batch rows fused in ONE MXU matmul.
    conv = jnp.dot(x_ref[...], p_ref[pl.ds(0, KE), :],
                   preferred_element_type=jnp.float32)            # (B*L_PAD, NF_PAD) f32

    # In-kernel validity mask (no HBM operand): row-within-batch-block vs per-column threshold.
    row = jax.lax.broadcasted_iota(jnp.int32, (B * L_PAD, NF_PAD), 0)
    col = jax.lax.broadcasted_iota(jnp.int32, (B * L_PAD, NF_PAD), 1)
    t = jnp.bitwise_and(row, L_PAD - 1)                           # L_PAD is a power of two
    thr = jnp.zeros_like(col)                                     # padded cols keep thr=0
    for i, k in enumerate(KERNEL_SIZES):                          # static, unrolled at trace time
        thr = jnp.where((col >= i * NFEATURE_MAPS) & (col < (i + 1) * NFEATURE_MAPS),
                        KMAX - k, thr)
    valid = (t >= thr) & (t < L)   # padded (zero-weight) cols keep >=1 zero-valued valid row
    masked = jnp.where(valid, conv, NEG)

    # Global max-pool over conv positions. Conv bias is NOT added here: it was folded through
    # W1 into the classifier bias (exact), which lives in the w2 bias row below.
    pooled = jnp.max(masked.reshape(B, L_PAD, NF_PAD), axis=1)    # (B, NF_PAD) f32

    # TODO(synk): dropout layers are identity in eval/inference mode; not implemented.
    # Split classifier: pooled @ w1 + [word_center, 1, 0...] @ [w2; bias; 0...]  (no concat).
    w1 = p_ref[pl.ds(KE, NF_PAD), :]
    w2 = p_ref[pl.ds(KE + NF_PAD, W_PAD), :]
    out_ref[...] = (jnp.dot(pooled.astype(jnp.bfloat16), w1, preferred_element_type=jnp.float32)
                    + jnp.dot(wc_ref[...], w2, preferred_element_type=jnp.float32))


# ---------------- Forward (embedding glue + pallas_call fused under one jit) ----------------
_FLOPS = 2 * (B * L_PAD) * KE * NF_PAD + 2 * B * NF_PAD * C_PAD + 2 * B * W_PAD * C_PAD
_BYTES = (B * L_PAD) * KE * 2 + P_ROWS * 128 * 2 + B * W_PAD * 2 + B * C_PAD * 4


def forward_fn(input_ids, input_ners, input_positions,
               word_emb, ner_emb, pos_emb, params_slab):
    # TODO(synk): embedding gather + im2col could move fully in-kernel via
    # PrefetchScalarGridSpec(num_scalar_prefetch=3); here it is fused under the same jit.
    we = word_emb[input_ids]                             # (B, S, 300)
    ne = ner_emb[input_ners]                             # (B, S, ENTITY_DIM)
    pe = pos_emb[input_positions]                        # (B, S, POSITION_DIM)
    emb = jnp.concatenate([we, ne, pe], axis=-1)         # (B, S, E)

    sp2 = L_PAD + KMAX - 1                               # padded sequence length for im2col
    emb_pad = jnp.pad(emb, ((0, 0), (KMAX - 1, sp2 - S - (KMAX - 1)), (0, 0)))  # (B, sp2, E)
    x_im2col = jnp.concatenate([emb_pad[:, dk:dk + L_PAD, :] for dk in range(KMAX)], axis=-1)
    x_im2col = x_im2col.reshape(B * L_PAD, KE).astype(jnp.bfloat16)             # (32, 1280)

    # Word-center block with a constant-1 column at WORD_DIM carrying the folded bias via w2.
    wc = we[:, WINDOW_SIZE, :]                           # (B, 300)
    wc_pad = jnp.zeros((B, W_PAD), jnp.float32)
    wc_pad = wc_pad.at[:, :WORD_DIM].set(wc).at[:, WORD_DIM].set(1.0).astype(jnp.bfloat16)

    vmem = pl.BlockSpec(memory_space=pltpu.MemorySpace.VMEM)
    logits_pad = pl.pallas_call(
        cnn_classifier_kernel,
        out_shape=jax.ShapeDtypeStruct((B, C_PAD), jnp.float32),
        in_specs=[vmem, vmem, vmem],
        out_specs=vmem,
        cost_estimate=pl.CostEstimate(flops=_FLOPS, transcendentals=0, bytes_accessed=_BYTES),
    )(x_im2col, params_slab, wc_pad)
    return logits_pad[:, :NUM_CLASS_EVENTS]


forward = jax.jit(forward_fn)


# ---------------- Parameter / input setup (deterministic, synthetic) ----------------
def renorm_rows(table, max_norm):
    # emulate torch nn.Embedding(max_norm=...) by pre-renormalizing rows (L2).
    norms = jnp.sqrt(jnp.sum(table * table, axis=-1, keepdims=True))
    scale = jnp.minimum(1.0, max_norm / jnp.maximum(norms, 1e-12))
    return table * scale


def build_param_slab(conv_w_torch, conv_b_torch, cls_w_torch, cls_b_torch):
    """Pack conv weights + split classifier (with conv bias folded through W1) into one
    (P_ROWS, 128) bf16 slab: rows [0,KE)=conv_w, [KE,KE+NF_PAD)=w1, rest=w2 (+bias row)."""
    # Fused conv weight: row = dk*E + e, col = i*F + f ; dk >= k and col >= NF are zero.
    conv_w4 = jnp.zeros((KMAX, EMB_DIM, NKS, NFEATURE_MAPS), jnp.float32)
    for i, k in enumerate(KERNEL_SIZES):
        conv_w4 = conv_w4.at[:k, :, i, :].set(jnp.transpose(conv_w_torch[i][:, 0], (1, 2, 0)))
    conv_w_mat = jnp.pad(conv_w4.reshape(KE, NF), ((0, 0), (0, NF_PAD - NF)))   # (KE, 128)

    # Classifier, split + permuted to kernel feature order (kernel: i*F+f, torch: f*NKS+i).
    cls_w_t = cls_w_torch.T                                                     # (D_IN, C)
    perm = jnp.array([f * NKS + i for i in range(NKS) for f in range(NFEATURE_MAPS)], jnp.int32)
    w1_real = cls_w_t[perm]                                                     # (NF, C)
    w1 = jnp.zeros((NF_PAD, C_PAD), jnp.float32).at[:NF, :NUM_CLASS_EVENTS].set(w1_real)

    # Fold conv bias through W1 into the classifier bias (exact): b_eff = b_cls + b_conv @ W1.
    conv_b_kernel = jnp.stack(conv_b_torch, 0).reshape(NF)                      # order i*F + f
    clsb_eff = cls_b_torch + conv_b_kernel @ w1_real                            # (C,)

    w2 = (jnp.zeros((W_PAD, C_PAD), jnp.float32)
          .at[:WORD_DIM, :NUM_CLASS_EVENTS].set(cls_w_t[NF:])
          .at[WORD_DIM, :NUM_CLASS_EVENTS].set(clsb_eff))                       # bias row

    return jnp.concatenate([conv_w_mat, w1, w2], axis=0).astype(jnp.bfloat16)   # (1792, 128)


def ref_forward_torch_semantics(input_ids, input_ners, input_positions,
                                word_emb, ner_emb, pos_emb,
                                conv_w_t, conv_b_t, cls_w_t, cls_b_t):
    """Pure-JAX f32 replica of the PyTorch forward (torch feature ordering)."""
    we = word_emb[input_ids]
    ne = ner_emb[input_ners]
    pe = pos_emb[input_positions]
    emb = jnp.concatenate([we, ne, pe], axis=-1)
    word_center = we[:, WINDOW_SIZE, :]
    pooled_list = []
    for i, k in enumerate(KERNEL_SIZES):
        xp = jnp.pad(emb, ((0, 0), (k - 1, k - 1), (0, 0)))
        lk = S + k - 1
        o = jnp.zeros((B, lk, NFEATURE_MAPS), jnp.float32)
        for dk in range(k):
            o = o + jnp.einsum('ble,fe->blf', xp[:, dk:dk + lk, :], conv_w_t[i][:, 0, dk, :])
        o = o + conv_b_t[i][None, None, :]
        pooled_list.append(jnp.max(o, axis=1))           # (B, F)
    total = jnp.stack(pooled_list, axis=2)               # (B, F, NKS)
    cnn_feat = total.reshape(B, -1)                      # torch flatten: f*NKS + i
    full = jnp.concatenate([cnn_feat, word_center], axis=-1)
    return full @ cls_w_t.T + cls_b_t[None, :]


if __name__ == "__main__":
    keys = jax.random.split(jax.random.PRNGKey(0), 16)

    # Embedding tables (padding_idx=0 rows zeroed; max_norm emulated by pre-renorm).
    word_emb = 0.2 * jax.random.normal(keys[0], (VOCAB_WORD_SIZE, WORD_DIM), jnp.float32)
    word_emb = word_emb.at[0].set(0.0)
    ner_emb = renorm_rows(jax.random.normal(keys[1], (NUM_CLASS_ENTITIES, ENTITY_DIM),
                                            jnp.float32).at[0].set(0.0), MAX_L2NORM)
    pos_emb = renorm_rows(jax.random.normal(keys[2], (POSITION_VOCAB, POSITION_DIM),
                                            jnp.float32).at[0].set(0.0), MAX_L2NORM)

    # Conv2d / Linear params in torch layout.
    conv_w_torch, conv_b_torch = [], []
    for i, k in enumerate(KERNEL_SIZES):
        conv_w_torch.append(0.1 * jax.random.normal(keys[3 + i],
                                                    (NFEATURE_MAPS, 1, k, EMB_DIM), jnp.float32))
        conv_b_torch.append(0.1 * jax.random.normal(keys[6 + i], (NFEATURE_MAPS,), jnp.float32))
    cls_w_torch = 0.1 * jax.random.normal(keys[9], (NUM_CLASS_EVENTS, D_IN), jnp.float32)
    cls_b_torch = 0.1 * jax.random.normal(keys[10], (NUM_CLASS_EVENTS,), jnp.float32)

    # Packed bf16 parameter slab (single kernel operand for all weights + folded biases).
    params_slab = build_param_slab(conv_w_torch, conv_b_torch, cls_w_torch, cls_b_torch)

    # Inputs.
    input_ids = jax.random.randint(keys[11], (B, S), 1, VOCAB_WORD_SIZE)
    input_ners = jax.random.randint(keys[12], (B, S), 0, NUM_CLASS_ENTITIES)
    input_positions = jax.random.randint(keys[13], (B, S), 0, POSITION_VOCAB)

    logits = forward(input_ids, input_ners, input_positions,
                     word_emb, ner_emb, pos_emb, params_slab)
    logits = jax.block_until_ready(logits)

    ref = ref_forward_torch_semantics(input_ids, input_ners, input_positions,
                                      word_emb, ner_emb, pos_emb,
                                      conv_w_torch, conv_b_torch, cls_w_torch, cls_b_torch)
    ref = jax.block_until_ready(ref)

    assert logits.shape == (B, NUM_CLASS_EVENTS)
    # bf16 weights/activations on the MXU path (per perf review) vs an f32 reference.
    assert bool(jnp.allclose(logits, ref, atol=2e-2, rtol=2e-2)), "kernel mismatch vs reference"

    print("KERNEL_OK")
</pallas_src>

<mosaic_0001>
module attributes {stable_mosaic.version = 11 : i64} {
  func.func @cnn_classifier_kernel(%arg0: memref<32x1280xbf16, #tpu.memory_space<vmem>>, %arg1: memref<1792x128xbf16, #tpu.memory_space<vmem>>, %arg2: memref<2x384xbf16, #tpu.memory_space<vmem>>, %arg3: memref<2x128xf32, #tpu.memory_space<vmem>>) attributes {dimension_semantics = [], scalar_prefetch = 0 : i64, scratch_operands = 0 : i64, tpu.core_type = #tpu.core_type<tc>} {
    %c0 = arith.constant 0 : index
    %c0_0 = arith.constant 0 : index
    %0 = vector.load %arg0[%c0, %c0_0] : memref<32x1280xbf16, #tpu.memory_space<vmem>>, vector<32x1280xbf16>
    %c0_1 = arith.constant 0 : index
    %c0_2 = arith.constant 0 : index
    %1 = vector.load %arg1[%c0_1, %c0_2] : memref<1792x128xbf16, #tpu.memory_space<vmem>>, vector<1280x128xbf16>
    %cst = arith.constant dense<0.000000e+00> : vector<32x128xf32>
    %2 = tpu.matmul %0, %1, %cst {dimension_numbers = #tpu.dot_dimension_numbers<[1], [0], [0], [1], [0, 0, 1, 1], [], []>} : vector<32x1280xbf16>, vector<1280x128xbf16>, vector<32x128xf32> -> vector<32x128xf32>
    %3 = tpu.iota {dimensions = array<i32: 0>} : vector<32x128xi32>
    %4 = tpu.iota {dimensions = array<i32: 1>} : vector<32x128xi32>
    %c15_i32 = arith.constant 15 : i32
    %5 = vector.broadcast %c15_i32 : i32 to vector<32x128xi32>
    %6 = arith.andi %3, %5 : vector<32x128xi32>
    %c0_i32 = arith.constant 0 : i32
    %7 = vector.broadcast %c0_i32 : i32 to vector<32x128xi32>
    %c0_i32_3 = arith.constant 0 : i32
    %8 = vector.broadcast %c0_i32_3 : i32 to vector<32x128xi32>
    %9 = arith.cmpi sge, %4, %8 : vector<32x128xi32>
    %c16_i32 = arith.constant 16 : i32
    %10 = vector.broadcast %c16_i32 : i32 to vector<32x128xi32>
    %11 = arith.cmpi slt, %4, %10 : vector<32x128xi32>
    %12 = arith.andi %9, %11 : vector<32x128xi1>
    %c2_i32 = arith.constant 2 : i32
    %13 = vector.broadcast %c2_i32 : i32 to vector<32x128xi32>
    %14 = arith.select %12, %13, %7 : vector<32x128xi1>, vector<32x128xi32>
    %c16_i32_4 = arith.constant 16 : i32
    %15 = vector.broadcast %c16_i32_4 : i32 to vector<32x128xi32>
    %16 = arith.cmpi sge, %4, %15 : vector<32x128xi32>
    %c32_i32 = arith.constant 32 : i32
    %17 = vector.broadcast %c32_i32 : i32 to vector<32x128xi32>
    %18 = arith.cmpi slt, %4, %17 : vector<32x128xi32>
    %19 = arith.andi %16, %18 : vector<32x128xi1>
    %c1_i32 = arith.constant 1 : i32
    %20 = vector.broadcast %c1_i32 : i32 to vector<32x128xi32>
    %21 = arith.select %19, %20, %14 : vector<32x128xi1>, vector<32x128xi32>
    %c32_i32_5 = arith.constant 32 : i32
    %22 = vector.broadcast %c32_i32_5 : i32 to vector<32x128xi32>
    %23 = arith.cmpi sge, %4, %22 : vector<32x128xi32>
    %c48_i32 = arith.constant 48 : i32
    %24 = vector.broadcast %c48_i32 : i32 to vector<32x128xi32>
    %25 = arith.cmpi slt, %4, %24 : vector<32x128xi32>
    %26 = arith.andi %23, %25 : vector<32x128xi1>
    %c0_i32_6 = arith.constant 0 : i32
    %27 = vector.broadcast %c0_i32_6 : i32 to vector<32x128xi32>
    %28 = arith.select %26, %27, %21 : vector<32x128xi1>, vector<32x128xi32>
    %29 = arith.cmpi sge, %6, %28 : vector<32x128xi32>
    %c11_i32 = arith.constant 11 : i32
    %30 = vector.broadcast %c11_i32 : i32 to vector<32x128xi32>
    %31 = arith.cmpi slt, %6, %30 : vector<32x128xi32>
    %32 = arith.andi %29, %31 : vector<32x128xi1>
    %cst_7 = arith.constant -1.000000e+30 : f32
    %33 = vector.broadcast %cst_7 : f32 to vector<32x128xf32>
    %34 = arith.select %32, %2, %33 : vector<32x128xi1>, vector<32x128xf32>
    %35 = vector.shape_cast %34 : vector<32x128xf32> to vector<2x16x128xf32>
    %cst_8 = arith.constant dense<0xFF800000> : vector<2x128xf32>
    %36 = vector.multi_reduction <maximumf>, %35, %cst_8 [1] : vector<2x16x128xf32> to vector<2x128xf32>
    %c1280 = arith.constant 1280 : index
    %c0_9 = arith.constant 0 : index
    %37 = vector.load %arg1[%c1280, %c0_9] : memref<1792x128xbf16, #tpu.memory_space<vmem>>, vector<128x128xbf16>
    %c1408 = arith.constant 1408 : index
    %c0_10 = arith.constant 0 : index
    %38 = vector.load %arg1[%c1408, %c0_10] : memref<1792x128xbf16, #tpu.memory_space<vmem>>, vector<384x128xbf16>
    %39 = arith.truncf %36 : vector<2x128xf32> to vector<2x128xbf16>
    %cst_11 = arith.constant dense<0.000000e+00> : vector<2x128xf32>
    %40 = tpu.matmul %39, %37, %cst_11 {dimension_numbers = #tpu.dot_dimension_numbers<[1], [0], [0], [1], [0, 0, 1, 1], [], []>} : vector<2x128xbf16>, vector<128x128xbf16>, vector<2x128xf32> -> vector<2x128xf32>
    %c0_12 = arith.constant 0 : index
    %c0_13 = arith.constant 0 : index
    %41 = vector.load %arg2[%c0_12, %c0_13] : memref<2x384xbf16, #tpu.memory_space<vmem>>, vector<2x384xbf16>
    %cst_14 = arith.constant dense<0.000000e+00> : vector<2x128xf32>
    %42 = tpu.matmul %41, %38, %cst_14 {dimension_numbers = #tpu.dot_dimension_numbers<[1], [0], [0], [1], [0, 0, 1, 1], [], []>} : vector<2x384xbf16>, vector<384x128xbf16>, vector<2x128xf32> -> vector<2x128xf32>
    %43 = arith.addf %40, %42 : vector<2x128xf32>
    %c0_15 = arith.constant 0 : index
    %c0_16 = arith.constant 0 : index
    %44 = vector.load %arg3[%c0_15, %c0_16] : memref<2x128xf32, #tpu.memory_space<vmem>>, vector<2x128xf32>
    tpu.vector_store %arg3[%c0_15, %c0_16], %43 {strides = array<i32>} : memref<2x128xf32, #tpu.memory_space<vmem>>, vector<2x128xf32>,
    return
  }
}

</mosaic_0001>

<bundles_post_ra>
// kernel: forward_fn.1
= control target key start
LH: loop header
LB: loop body
LE: loop exit
PB: predicated region body
PF: predicated region fallthrough
CT: control target
= control target key end

     0   :  { %s2536_s0 = inlined_call_operand.vmem [shape: bf16[32,1280], index: 0, kind: input, shape index: {}]   ;;  %s2537_s1 = inlined_call_operand.vmem [shape: bf16[1792,128], index: 1, kind: input, shape index: {}]   ;;  %s2538_s2 = inlined_call_operand.vmem [shape: bf16[2,384], index: 2, kind: input, shape index: {}]   ;;  %s2539_s3 = inlined_call_operand.hbm [shape: f32[2,128], index: 3, kind: output, shape index: {}]  }
   0x1   :  { %v1866_v0 = vld [vmem:[%s2537_s1 + $0x40] sm:$0xff]   ;;  %v1868_v2 = vld [vmem:[%s2537_s1 + $0x48] sm:$0xff]   ;;  %v1870_v4 = vld [vmem:[%s2537_s1 + $0x50] sm:$0xff]  }
   0x2   :  { %v1867_v1 = vld [vmem:[%s2537_s1] sm:$0xff]   ;;  %1636 = vmatprep.subr.bf16.mxu1 %v1866_v0  ;;  %v1869_v3 = vld [vmem:[%s2537_s1 + $0x8] sm:$0xff]   ;;  %v1871_v5 = vld [vmem:[%s2537_s1 + $0x10] sm:$0xff]  }
   0x3   :  { %1637 = vmatpush3.bf16.msra.mxu1 %v1867_v1  ;;  %v1872_v6 = vld [vmem:[%s2537_s1 + $0x58] sm:$0xff]   ;;  %v1874_v8 = vld [vmem:[%s2537_s1 + $0x60] sm:$0xff]   ;;  %v1876_v10 = vld [vmem:[%s2537_s1 + $0x68] sm:$0xff]  }
   0x4   :  { %1638 = vmatprep.subr.bf16.mxu1 %v1868_v2  ;;  %v1873_v7 = vld [vmem:[%s2537_s1 + $0x18] sm:$0xff]   ;;  %v1875_v9 = vld [vmem:[%s2537_s1 + $0x20] sm:$0xff]   ;;  %v1877_v11 = vld [vmem:[%s2537_s1 + $0x28] sm:$0xff]  }
   0x5   :  { %v1884_v12 = vld [vmem:[%s2536_s0 + $0x4] ss:$40 sps:$4 sm:$0xff]   ;;  %v1878_v14 = vld [vmem:[%s2537_s1 + $0x70] sm:$0xff]   ;;  %v1880_v18 = vld [vmem:[%s2537_s1 + $0x78] sm:$0xff]  }
   0x6   :  { %v1885_v13 = vld [vmem:[%s2537_s1 + $0x140] sm:$0xff]   ;;  %808 = vmatprep.mubr.bf16.mxu1 %v1884_v12  ;;  %v1879_v16 = vld [vmem:[%s2537_s1 + $0x30] sm:$0xff]   ;;  %v1889_v17 = vld [vmem:[%s2537_s1 + $0x148] sm:$0xff]  }
   0x7   :  { %1639 = vmatpush3.bf16.msra.mxu1 %v1869_v3  ;;  %1692 = vmatprep.subr.bf16.mxu0 %v1885_v13  ;;  %v1887_v15 = vld [vmem:[%s2537_s1 + $0x100] sm:$0xff]   ;;  %v1891_v19 = vld [vmem:[%s2537_s1 + $0x108] sm:$0xff]   ;;  %v1881_v20 = vld [vmem:[%s2537_s1 + $0x38] sm:$0xff]  }
   0x8   :  { %1640 = vmatprep.subr.bf16.mxu1 %v1870_v4  ;;  %1693 = vmatpush3.bf16.msra.mxu0 %v1887_v15  ;;  %v1893_v21 = vld [vmem:[%s2537_s1 + $0x150] sm:$0xff]   ;;  %v1886_v22 = vld [vmem:[%s2537_s1 + $0xc0] sm:$0xff]   ;;  %v1897_v26 = vld [vmem:[%s2537_s1 + $0x158] sm:$0xff]  }
   0x9   :  { %1694 = vmatprep.subr.bf16.mxu0 %v1889_v17  ;;  %v1882_v23 = vld [vmem:[%s2536_s0] ss:$40 sps:$4 sm:$0xff]   ;;  %v1895_v24 = vld [vmem:[%s2537_s1 + $0x110] sm:$0xff]   ;;  %v1899_v28 = vld [vmem:[%s2537_s1 + $0x118] sm:$0xff]  }
   0xa   :  { %v1888_v25 = vld [vmem:[%s2537_s1 + $0x80] sm:$0xff]   ;;  %v1890_v27 = vld [vmem:[%s2537_s1 + $0xc8] sm:$0xff]   ;;  %v1894_v31 = vld [vmem:[%s2537_s1 + $0xd0] sm:$0xff]  }
   0xb   :  { %1641 = vmatpush3.bf16.msra.mxu1 %v1871_v5  ;;  %v1892_v29 = vld [vmem:[%s2537_s1 + $0x88] sm:$0xff]   ;;  %v1901_v30 = vld [vmem:[%s2537_s1 + $0x160] sm:$0xff]   ;;  %v1896_v33 = vld [vmem:[%s2537_s1 + $0x90] sm:$0xff]  }
   0xc   :  { %1642 = vmatprep.subr.bf16.mxu1 %v1872_v6  ;;  %1695 = vmatpush3.bf16.msra.mxu0 %v1891_v19  ;;  %v1903_v32 = vld [vmem:[%s2537_s1 + $0x120] sm:$0xff]   ;;  %v1905_v34 = vld [vmem:[%s2537_s1 + $0x168] sm:$0xff]   ;;  %v1898_v35 = vld [vmem:[%s2537_s1 + $0xd8] sm:$0xff]  }
   0xd   :  { %1696 = vmatprep.subr.bf16.mxu0 %v1893_v21  ;;  %v1907_v36 = vld [vmem:[%s2537_s1 + $0x128] sm:$0xff]   ;;  %v1908_v37 = vld [vmem:[%s2536_s0 + $0x54] ss:$40 sps:$4 sm:$0xff]   ;;  %v1911_v39 = vld [vmem:[%s2536_s0 + $0x50] ss:$40 sps:$4 sm:$0xff]  }
   0xe   :  { %v1900_v38 = vld [vmem:[%s2537_s1 + $0x98] sm:$0xff]   ;;  %v1912_v40 = vld [vmem:[%s2537_s1 + $0x170] sm:$0xff]   ;;  %v1902_v41 = vld [vmem:[%s2537_s1 + $0xe0] sm:$0xff]  }
   0xf   :  { %1643 = vmatpush3.bf16.msra.mxu1 %v1873_v7  ;;  %v1914_v42 = vld [vmem:[%s2537_s1 + $0x130] sm:$0xff]   ;;  %v1904_v43 = vld [vmem:[%s2537_s1 + $0xa0] sm:$0xff]   ;;  %v1916_v44 = vld [vmem:[%s2537_s1 + $0x178] sm:$0xff]  }
  0x10   :  { %1644 = vmatprep.subr.bf16.mxu1 %v1874_v8  ;;  %1697 = vmatpush3.bf16.msra.mxu0 %v1895_v24  ;;  %v1906_v45 = vld [vmem:[%s2537_s1 + $0xe8] sm:$0xff]   ;;  %v1918_v46 = vld [vmem:[%s2537_s1 + $0x138] sm:$0xff]   ;;  %v1913_v48 = vld [vmem:[%s2537_s1 + $0xf0] sm:$0xff]  }
  0x11   :  { %1698 = vmatprep.subr.bf16.mxu0 %v1897_v26  ;;  %v1910_v47 = vld [vmem:[%s2537_s1 + $0xa8] sm:$0xff]   ;;  %v1923_v50 = vld [vmem:[%s2536_s0 + $0x10] ss:$40 sps:$4 sm:$0xff]   ;;  %v1925_v52 = vld [vmem:[%s2536_s0 + $0x14] ss:$40 sps:$4 sm:$0xff]  }
  0x12   :  { %v1922_v49 = vld [vmem:[%s2536_s0 + $0xc] ss:$40 sps:$4 sm:$0xff]   ;;  %v1926_v53 = vld [vmem:[%s2537_s1 + $0x240] sm:$0xff]   ;;  %v1917_v54 = vld [vmem:[%s2537_s1 + $0xf8] sm:$0xff]   ;;  %906 = vmatprep.mubr.bf16.mxu0 %v1925_v52 }
  0x13   :  { %1645 = vmatpush3.bf16.msra.mxu1 %v1875_v9  ;;  %v1915_v51 = vld [vmem:[%s2537_s1 + $0xb0] sm:$0xff]   ;;  %v1928_v55 = vld [vmem:[%s2537_s1 + $0x200] sm:$0xff]   ;;  %v1919_v56 = vld [vmem:[%s2537_s1 + $0xb8] sm:$0xff]  }
  0x14   :  { %1646 = vmatprep.subr.bf16.mxu1 %v1876_v10  ;;  %1699 = vmatpush3.bf16.msra.mxu0 %v1899_v28  ;;  %v1930_v57 = vld [vmem:[%s2537_s1 + $0x248] sm:$0xff]   ;;  %v1927_v58 = vld [vmem:[%s2537_s1 + $0x1c0] sm:$0xff]   ;;  %v1936_v63 = vld [vmem:[%s2537_s1 + $0x250] sm:$0xff]  }
  0x15   :  { %1700 = vmatprep.subr.bf16.mxu0 %v1901_v30  ;;  %v1932_v59 = vld [vmem:[%s2537_s1 + $0x208] sm:$0xff]   ;;  %v1929_v61 = vld [vmem:[%s2537_s1 + $0x180] sm:$0xff]   ;;  %v1939_v2 = vld [vmem:[%s2537_s1 + $0x210] sm:$0xff]  }
  0x16   :  { %v1920_v60 = vld [vmem:[%s2536_s0 + $0x8] ss:$40 sps:$4 sm:$0xff]   ;;  %v1934_v62 = vld [vmem:[%s2536_s0 + $0x5c] ss:$40 sps:$4 sm:$0xff]   ;;  %v1937_v6 = vld [vmem:[%s2536_s0 + $0x58] ss:$40 sps:$4 sm:$0xff]  }
  0x17   :  { %1647 = vmatpush3.bf16.msra.mxu1 %v1877_v11  ;;  %v1931_v0 = vld [vmem:[%s2537_s1 + $0x1c8] sm:$0xff]   ;;  %v1938_v4 = vld [vmem:[%s2537_s1 + $0x1d0] sm:$0xff]   ;;  %v1944_v7 = vld [vmem:[%s2537_s1 + $0x258] sm:$0xff]  }
  0x18   :  { %1648 = vmatprep.subr.bf16.mxu1 %v1878_v14  ;;  %1701 = vmatpush3.bf16.msra.mxu0 %v1903_v32  ;;  %v1933_v1 = vld [vmem:[%s2537_s1 + $0x188] sm:$0xff]   ;;  %v1942_v8 = vld [vmem:[%s2537_s1 + $0x190] sm:$0xff]   ;;  %v1946_v9 = vld [vmem:[%s2537_s1 + $0x218] sm:$0xff]  }
  0x19   :  { %1702 = vmatprep.subr.bf16.mxu0 %v1905_v34  ;;  %v1940_v3 = vld [vmem:[%s2536_s0 + $0x64] ss:$40 sps:$4 sm:$0xff]   ;;  %v1943_v5 = vld [vmem:[%s2536_s0 + $0x60] ss:$40 sps:$4 sm:$0xff]   ;;  %v1945_v10 = vld [vmem:[%s2537_s1 + $0x1d8] sm:$0xff]  }
  0x1a   :  { %v1948_v11 = vld [vmem:[%s2537_s1 + $0x260] sm:$0xff]   ;;  %v1947_v12 = vld [vmem:[%s2537_s1 + $0x198] sm:$0xff]   ;;  %v1952_v15 = vld [vmem:[%s2537_s1 + $0x268] sm:$0xff]  }
  0x1b   :  { %1649 = vmatpush3.bf16.msra.mxu1 %v1879_v16  ;;  %v1950_v13 = vld [vmem:[%s2537_s1 + $0x220] sm:$0xff]   ;;  %v1954_v17 = vld [vmem:[%s2537_s1 + $0x228] sm:$0xff]   ;;  %v1956_v19 = vld [vmem:[%s2537_s1 + $0x270] sm:$0xff]  }
  0x1c   :  { %1650 = vmatprep.subr.bf16.mxu1 %v1880_v18  ;;  %1703 = vmatpush3.bf16.msra.mxu0 %v1907_v36  ;;  %v1949_v14 = vld [vmem:[%s2537_s1 + $0x1e0] sm:$0xff]   ;;  %v1953_v18 = vld [vmem:[%s2537_s1 + $0x1e8] sm:$0xff]   ;;  %v1958_v21 = vld [vmem:[%s2537_s1 + $0x230] sm:$0xff]  }
  0x1d   :  { %1704 = vmatprep.subr.bf16.mxu0 %v1912_v40  ;;  %v1951_v16 = vld [vmem:[%s2537_s1 + $0x1a0] sm:$0xff]   ;;  %v1959_v24 = vld [vmem:[%s2537_s1 + $0x1b0] sm:$0xff]   ;;  %v1961_v26 = vld [vmem:[%s2537_s1 + $0x1f8] sm:$0xff]  }
  0x1e   :  { %v1966_v28 = vld [vmem:[%s2536_s0 + $0x24] ss:$40 sps:$4 sm:$0xff]   ;;  %v1967_v32 = vld [vmem:[%s2536_s0 + $0x18] ss:$40 sps:$4 sm:$0xff]  }
  0x1f   :  { %1651 = vmatpush3.bf16.msra.mxu1 %v1881_v20  ;;  %v1955_v20 = vld [vmem:[%s2537_s1 + $0x1a8] sm:$0xff]   ;;  %v1969_v30 = vld [vmem:[%s2536_s0 + $0x1c] ss:$40 sps:$4 sm:$0xff]   ;;  %v1974_v34 = vld [vmem:[%s2536_s0 + $0x70] ss:$40 sps:$4 sm:$0xff]  }
  0x20   :  { %1664 = vmatprep.subr.bf16.mxu1 %v1886_v22  ;;  %1705 = vmatpush3.bf16.msra.mxu0 %v1914_v42  ;;  %v1957_v22 = vld [vmem:[%s2537_s1 + $0x1f0] sm:$0xff]  }
  0x21   :  { %1706 = vmatprep.subr.bf16.mxu0 %v1916_v44 }
  0x22   :  { %809 = vmatmul.mubr.bf16.vlgmr.msra.gmra.mrb[0].mxu1 %v1882_v23  ;;  %v1960_v23 = vld [vmem:[%s2537_s1 + $0x278] sm:$0xff]  }
  0x23   :  { %1665 = vmatpush3.bf16.msra.mxu1 %v1888_v25  ;;  %816 = vmatprep.mubr.bf16.mxu1 %v1908_v37  ;;  %v1962_v25 = vld [vmem:[%s2537_s1 + $0x238] sm:$0xff]  }
  0x24   :  { %1666 = vmatprep.subr.bf16.mxu1 %v1890_v27  ;;  %1707 = vmatpush3.bf16.msra.mxu0 %v1918_v46  ;;  %v1964_v27 = vld [vmem:[%s2536_s0 + $0x20] ss:$40 sps:$4 sm:$0xff]  }
  0x25   :  { %1748 = vmatprep.subr.bf16.mxu0 %v1926_v53 }
  0x27   :  { %1667 = vmatpush3.bf16.msra.mxu1 %v1892_v29  ;;  %907 = vmatmul.mubr.bf16.vlgmr.msra.gmra.mrb[0].mxu0 %v1923_v50  ;;  %v1963_v29 = vld [vmem:[%s2537_s1 + $0x1b8] sm:$0xff]  }
  0x28   :  { %1668 = vmatprep.subr.bf16.mxu1 %v1894_v31  ;;  %1749 = vmatpush3.bf16.msra.mxu0 %v1928_v55  ;;  %v1970_v31 = vld [vmem:[%s2536_s0 + $0x74] ss:$40 sps:$4 sm:$0xff]  }
  0x29   :  { %1750 = vmatprep.subr.bf16.mxu0 %v1930_v57  ;;  %914 = vmatprep.mubr.bf16.mxu0 %v1940_v3 }
  0x2a   :  { %817 = vmatmul.mubr.bf16.gmra.mrb[4].mxu1 %v1911_v39 }
  0x2b   :  { %1669 = vmatpush3.bf16.msra.mxu1 %v1896_v33  ;;  %857 = vmatprep.mubr.bf16.mxu1 %v1922_v49  ;;  %v1972_v33 = vld [vmem:[%s2536_s0 + $0x6c] ss:$40 sps:$4 sm:$0xff]  }
  0x2c   :  { %1670 = vmatprep.subr.bf16.mxu1 %v1898_v35  ;;  %1751 = vmatpush3.bf16.msra.mxu0 %v1932_v59  ;;  %v1975_v35 = vld [vmem:[%s2536_s0 + $0x68] ss:$40 sps:$4 sm:$0xff]  }
  0x2d   :  { %1752 = vmatprep.subr.bf16.mxu0 %v1936_v63 }
  0x2f   :  { %1671 = vmatpush3.bf16.msra.mxu1 %v1900_v38  ;;  %915 = vmatmul.mubr.bf16.gmra.mrb[4].mxu0 %v1943_v5 }
  0x30   :  { %1672 = vmatprep.subr.bf16.mxu1 %v1902_v41  ;;  %1753 = vmatpush3.bf16.msra.mxu0 %v1939_v2 }
  0x31   :  { %1754 = vmatprep.subr.bf16.mxu0 %v1944_v7  ;;  %1004 = vmatprep.mubr.bf16.mxu0 %v1966_v28 }
  0x33   :  { %1673 = vmatpush3.bf16.msra.mxu1 %v1904_v43 }
  0x34   :  { %1674 = vmatprep.subr.bf16.mxu1 %v1906_v45  ;;  %1755 = vmatpush3.bf16.msra.mxu0 %v1946_v9 }
  0x35   :  { %1756 = vmatprep.subr.bf16.mxu0 %v1948_v11 }
  0x37   :  { %1675 = vmatpush3.bf16.msra.mxu1 %v1910_v47 }
  0x38   :  { %1676 = vmatprep.subr.bf16.mxu1 %v1913_v48  ;;  %1757 = vmatpush3.bf16.msra.mxu0 %v1950_v13 }
  0x39   :  { %1758 = vmatprep.subr.bf16.mxu0 %v1952_v15 }
  0x3b   :  { %1677 = vmatpush3.bf16.msra.mxu1 %v1915_v51 }
  0x3c   :  { %1678 = vmatprep.subr.bf16.mxu1 %v1917_v54  ;;  %1759 = vmatpush3.bf16.msra.mxu0 %v1954_v17 }
  0x3d   :  { %1760 = vmatprep.subr.bf16.mxu0 %v1956_v19 }
  0x3f   :  { %1679 = vmatpush3.bf16.msra.mxu1 %v1919_v56 }
  0x40   :  { %1720 = vmatprep.subr.bf16.mxu1 %v1927_v58  ;;  %1761 = vmatpush3.bf16.msra.mxu0 %v1958_v21 }
  0x41   :  { %1762 = vmatprep.subr.bf16.mxu0 %v1960_v23 }
  0x42   :  { %858 = vmatmul.mubr.bf16.vlgmr.msra.gmra.mrb[8].mxu1 %v1920_v60 }
  0x43   :  { %1721 = vmatpush3.bf16.msra.mxu1 %v1929_v61  ;;  %865 = vmatprep.mubr.bf16.mxu1 %v1934_v62 }
  0x44   :  { %1722 = vmatprep.subr.bf16.mxu1 %v1931_v0  ;;  %1763 = vmatpush3.bf16.msra.mxu0 %v1962_v25 }
  0x47   :  { %1723 = vmatpush3.bf16.msra.mxu1 %v1933_v1  ;;  %1005 = vmatmul.mubr.bf16.vlgmr.msra.gmra.mrb[8].mxu0 %v1964_v27 }
  0x48   :  { %1724 = vmatprep.subr.bf16.mxu1 %v1938_v4  ;;  %1012 = vmatprep.mubr.bf16.mxu0 %v1970_v31 }
  0x4a   :  { %866 = vmatmul.mubr.bf16.gmra.mrb[12].mxu1 %v1937_v6 }
  0x4b   :  { %1725 = vmatpush3.bf16.msra.mxu1 %v1942_v8  ;;  %955 = vmatprep.mubr.bf16.mxu1 %v1969_v30 }
  0x4c   :  { %1726 = vmatprep.subr.bf16.mxu1 %v1945_v10 }
  0x4f   :  { %1727 = vmatpush3.bf16.msra.mxu1 %v1947_v12  ;;  %1013 = vmatmul.mubr.bf16.gmra.mrb[12].mxu0 %v1974_v34 }
  0x50   :  { %1728 = vmatprep.subr.bf16.mxu1 %v1949_v14 }
  0x53   :  { %1729 = vmatpush3.bf16.msra.mxu1 %v1951_v16 }
  0x54   :  { %1730 = vmatprep.subr.bf16.mxu1 %v1953_v18 }
  0x57   :  { %1731 = vmatpush3.bf16.msra.mxu1 %v1955_v20 }
  0x58   :  { %1732 = vmatprep.subr.bf16.mxu1 %v1957_v22 }
  0x5b   :  { %1733 = vmatpush3.bf16.msra.mxu1 %v1959_v24 }
  0x5c   :  { %1734 = vmatprep.subr.bf16.mxu1 %v1961_v26 }
  0x5f   :  { %1735 = vmatpush3.bf16.msra.mxu1 %v1963_v29 }
  0x62   :  { %956 = vmatmul.mubr.bf16.vlgmr.msra.gmra.mrb[16].mxu1 %v1967_v32 }
  0x63   :  { %963 = vmatprep.mubr.bf16.mxu1 %v1972_v33 }
  0x6a   :  { %964 = vmatmul.mubr.bf16.gmra.mrb[20].mxu1 %v1975_v35 }
  0x6b   :  { %8 = vsyncpa [#allocation3], 0  ;;  %v1976_v36 = vld [vmem:[%s2537_s1 + $0x340] sm:$0xff]   ;;  %v2032_v37 = vmov 0.0   ;;  %v1977_v38 = vld [vmem:[%s2537_s1 + $0x348] sm:$0xff]   ;;  %v1021_v43 = vlaneseq  ;;  %v2034_v53 = vmov 0  }
  0x6c   :  { %1816 = vmatprep.subr.bf16.mxu0 %v2032_v37  ;;  %v1978_v39 = vld [vmem:[%s2537_s1 + $0x350] sm:$0xff]   ;;  %v1979_v40 = vld [vmem:[%s2537_s1 + $0x358] sm:$0xff]   ;;  %v1980_v41 = vld [vmem:[%s2537_s1 + $0x360] sm:$0xff]   ;;  %v2033_v45 = vmov 1966171168   ;;  %vm2035_vm10 = vmmov 0  }
  0x6d   :  { %1817 = vmatpush3.bf16.msra.mxu0 %v1976_v36  ;;  %v1981_v42 = vld [vmem:[%s2537_s1 + $0x368] sm:$0xff]   ;;  %v1982_v44 = vld [vmem:[%s2537_s1 + $0x370] sm:$0xff]   ;;  %v1151_v46 = vunpack.c.l.s4 %v2033_v45  ;;  %v1983_v47 = vld [vmem:[%s2537_s1 + $0x300] sm:$0xff]   ;;  %v1022_v48 = vshrl.u32 %v1021_v43, 7  ;;  %v1027_v49 = vand.u32 127, %v1021_v43  ;;  %1832 = vmatprep.mubr.msk.bf16.mxu0 %vm2035_vm10, %v2032_v37 }
  0x6e   :  { %1818 = vmatprep.subr.bf16.mxu0 %v2032_v37  ;;  %v1984_v50 = vld [vmem:[%s2537_s1 + $0x2c0] sm:$0xff]   ;;  %1776 = vmatprep.subr.bf16.mxu1 %v1983_v47  ;;  %v1985_v52 = vld [vmem:[%s2537_s1 + $0x378] sm:$0xff]   ;;  %v1986_v56 = vld [vmem:[%s2537_s1 + $0x308] sm:$0xff]  }
  0x6f   :  { %v1152_v51 = vunpack.c.0.s8 %v1151_v46  ;;  %vm1033_vm0 = vcmp.lt.s32.totalorder %v1027_v49, 16  ;;  %vm1036_vm1 = vcmp.ge.s32.totalorder %v1027_v49, 16  ;;  %vm1037_vm2 = vcmp.lt.s32.totalorder %v1027_v49, 32  ;;  %1777 = vmatpush3.bf16.msra.mxu1 %v1984_v50  ;;  %v1987_v59 = vld [vmem:[%s2537_s1 + $0x2c8] sm:$0xff]   ;;  %v1988_v4 = vld [vmem:[%s2537_s1 + $0x280] sm:$0xff]   ;;  %v1989_v5 = vld [vmem:[%s2537_s1 + $0x310] sm:$0xff]  }
  0x70   :  { %v1035_v54 = vsel %vm1033_vm0, 2, %v2034_v53  ;;  %vm1038_vm3 = vmand %vm1036_vm1, %vm1037_vm2  ;;  %vm1040_vm4 = vcmp.ge.s32.totalorder %v1027_v49, 32  ;;  %vm1041_vm5 = vcmp.lt.s32.totalorder %v1027_v49, 48  ;;  %v1023_v55 = vadd.s32 8, %v1022_v48  ;;  %1778 = vmatprep.subr.bf16.mxu1 %v1986_v56  ;;  %v1990_v7 = vld [vmem:[%s2537_s1 + $0x2d0] sm:$0xff]   ;;  %v1991_v10 = vld [vmem:[%s2537_s1 + $0x288] sm:$0xff]  }
  0x71   :  { %1819 = vmatpush3.bf16.msra.mxu0 %v1977_v38  ;;  %v1028_v57 = vand.u32 15, %v1022_v48  ;;  %v1039_v58 = vsel %vm1038_vm3, 1, %v1035_v54  ;;  %vm1042_vm6 = vmand %vm1040_vm4, %vm1041_vm5  ;;  %v2401_v60 = vsub.s32 %v1152_v51, %v1022_v48  ;;  %v1603_v63 = vld.sshfl [vmem:[%s2538_s2] sm:$0x13 pattern:$0x75316420] }
  0x72   :  { %1820 = vmatprep.subr.bf16.mxu0 %v2032_v37  ;;  %v1043_v61 = vsel %vm1042_vm6, 0, %v1039_v58  ;;  %v1029_v62 = vand.u32 15, %v1023_v55  ;;  %v1024_v8 = vadd.s32 16, %v1022_v48  ;;  %v1025_v9 = vadd.s32 24, %v1022_v48  ;;  %v1992_v11 = vld [vmem:[%s2537_s1 + $0x318] sm:$0xff]   ;;  %v1994_v18 = vld [vmem:[%s2537_s1 + $0x290] sm:$0xff]  }
  0x73   :  { %vm2407_vm7 = vcmp.ge.s32.totalorder %v1028_v57, %v1043_v61  ;;  %1779 = vmatpush3.bf16.msra.mxu1 %v1987_v59  ;;  %v1156_v1 = vrot.slane %v1603_v63, %v2401_v60  ;;  %v1993_v13 = vld [vmem:[%s2537_s1 + $0x2d8] sm:$0xff]   ;;  %v1995_v19 = vld [vmem:[%s2537_s1 + $0x320] sm:$0xff]   ;;  %v1998_v22 = vld [vmem:[%s2537_s1 + $0x328] sm:$0xff]   ;;  %v1149_v30 = vcombine.high %v1603_v63, %v1603_v63  ;;  %vm1396_vm0 = vcmask 1041409  }
  0x74   :  { %vm2412_vm8 = vcmp.ge.s32.totalorder %v1029_v62, %v1043_v61  ;;  %vm2416_vm9 = vcmp.lt.s32.totalorder %v1029_v62, 11  ;;  %1780 = vmatprep.subr.bf16.mxu1 %v1989_v5  ;;  %v1030_v12 = vand.u32 15, %v1024_v8  ;;  %v1031_v14 = vand.u32 15, %v1025_v9  ;;  %v1996_v20 = vld [vmem:[%s2537_s1 + $0x2e0] sm:$0xff]   ;;  %v1997_v21 = vld [vmem:[%s2537_s1 + $0x298] sm:$0xff]   ;;  %v1999_v23 = vld [vmem:[%s2537_s1 + $0x2e8] sm:$0xff]  }
  0x75   :  { %1821 = vmatpush3.bf16.msra.mxu0 %v1978_v39  ;;  %vm1053_vm11 = vmand %vm2412_vm8, %vm2416_vm9  ;;  %v1164_v6 = vcombine.high %v1156_v1, %v1156_v1  ;;  %v2000_v24 = vld [vmem:[%s2537_s1 + $0x2a0] sm:$0xff]   ;;  %v2001_v25 = vld [vmem:[%s2537_s1 + $0x330] sm:$0xff]   ;;  %v1163_v31 = vrot.slane %v1149_v30, %v2401_v60 }
  0x76   :  { %1822 = vmatprep.subr.bf16.mxu0 %v2032_v37  ;;  %vm2445_vm12 = vcmp.ge.s32.totalorder %v1030_v12, %v1043_v61  ;;  %vm2449_vm13 = vcmp.ge.s32.totalorder %v1031_v14, %v1043_v61  ;;  %vm2453_vm14 = vcmp.lt.s32.totalorder %v1031_v14, 11  ;;  %v2002_v26 = vld [vmem:[%s2537_s1 + $0x2f0] sm:$0xff]   ;;  %v2003_v27 = vld [vmem:[%s2537_s1 + $0x2a8] sm:$0xff]   ;;  %v2004_v28 = vld [vmem:[%s2537_s1 + $0x338] sm:$0xff]  }
  0x77   :  { %1781 = vmatpush3.bf16.msra.mxu1 %v1990_v7  ;;  %vm1055_vm15 = vmand %vm2449_vm13, %vm2453_vm14  ;;  %v2005_v29 = vld [vmem:[%s2537_s1 + $0x2f8] sm:$0xff]   ;;  %v2006_v32 = vld [vmem:[%s2537_s1 + $0x2b0] sm:$0xff]   ;;  %1344 = vmatprep.mubr.bf16.mxu1 %v1163_v31 }
  0x78   :  { %1782 = vmatprep.subr.bf16.mxu1 %v1992_v11  ;;  %v2007_v33 = vld [vmem:[%s2537_s1 + $0x2b8] sm:$0xff]   ;;  %s2036_s1 = smov [#allocation2]  }
  0x79   :  { %1823 = vmatpush3.bf16.msra.mxu0 %v1979_v40  ;;  %s1495_s30 = sshll.u32 %s2036_s1, 4  ;;  %s1496_s30 = int_to_ptr.vmem [resolvable:$true] %s1495_s30 }
  0x7a   :  { %1824 = vmatprep.subr.bf16.mxu0 %v2032_v37  ;;  %s2008_s4 = scalar_lea.vmem %s1496_s30, 32  ;;  %p2013_p1 = scmp.lt.s32.totalorder %s1496_s30, %s1496_s30 }
  0x7b   :  { %1783 = vmatpush3.bf16.msra.mxu1 %v1993_v13  ;;  %p2009_p0 = scmp.ne.s32.totalorder %s1496_s30, %s2008_s4  ;;  %p2014_p2 = scmp.lt.s32.totalorder %s2008_s4, %s2008_s4 }
  0x7c   :  { %1784 = vmatprep.subr.bf16.mxu1 %v1995_v19 }
  0x7d   :  { %1825 = vmatpush3.bf16.msra.mxu0 %v1980_v41  ;;  %p2015_p3 = por %p2014_p2, %p2013_p1 }
  0x7e   :  { %1826 = vmatprep.subr.bf16.mxu0 %v2032_v37 }
  0x7f   :  { %1785 = vmatpush3.bf16.msra.mxu1 %v1996_v20  ;;  %p2016_p4 = pnand %p2015_p3, %p2009_p0 }
  0x80   :  { %1786 = vmatprep.subr.bf16.mxu1 %v1998_v22 }
  0x81   :  { %1827 = vmatpush3.bf16.msra.mxu0 %v1981_v42 }
  0x82   :  { %1828 = vmatprep.subr.bf16.mxu0 %v2032_v37 }
  0x83   :  { %1787 = vmatpush3.bf16.msra.mxu1 %v1999_v23 }
  0x84   :  { %1788 = vmatprep.subr.bf16.mxu1 %v2001_v25 }
  0x85   :  { %1829 = vmatpush3.bf16.msra.mxu0 %v1982_v44 }
  0x86   :  { %1830 = vmatprep.subr.bf16.mxu0 %v2032_v37 }
  0x87   :  { %1789 = vmatpush3.bf16.msra.mxu1 %v2002_v26 }
  0x88   :  { %1790 = vmatprep.subr.bf16.mxu1 %v2004_v28 }
  0x89   :  { %1831 = vmatpush3.bf16.msra.mxu0 %v1985_v52 }
  0x8a   :  { %1836 = vmatprep.subr.bf16.mxu0 %v2032_v37 }
  0x8b   :  { %1791 = vmatpush3.bf16.msra.mxu1 %v2005_v29 }
  0x8c   :  { %1833 = vmatmul.mubr.bf16.vlgmr.msra.gmra.mrb[16].mxu0 %v1164_v6 }
  0x8d   :  { %1837 = vmatpush3.bf16.msra.mxu0 %v1988_v4  ;;  %1852 = vmatprep.mubr.msk.bf16.mxu0 %vm2035_vm10, %v2032_v37 }
  0x8e   :  { %1838 = vmatprep.subr.bf16.mxu0 %v2032_v37  ;;  %1345 = vmatmul.mubr.bf16.vlgmr.msra.gmra.mrb[24].mxu1 %v1156_v1 }
  0x91   :  { %1839 = vmatpush3.bf16.msra.mxu0 %v1991_v10 }
  0x92   :  { %1840 = vmatprep.subr.bf16.mxu0 %v2032_v37 }
  0x95   :  { %1841 = vmatpush3.bf16.msra.mxu0 %v1994_v18 }
  0x96   :  { %1842 = vmatprep.subr.bf16.mxu0 %v2032_v37 }
  0x99   :  { %1843 = vmatpush3.bf16.msra.mxu0 %v1997_v21 }
  0x9a   :  { %1844 = vmatprep.subr.bf16.mxu0 %v2032_v37 }
  0x9d   :  { %1845 = vmatpush3.bf16.msra.mxu0 %v2000_v24 }
  0x9e   :  { %1846 = vmatprep.subr.bf16.mxu0 %v2032_v37 }
  0xa1   :  { %1847 = vmatpush3.bf16.msra.mxu0 %v2003_v27 }
  0xa2   :  { %1848 = vmatprep.subr.bf16.mxu0 %v2032_v37 }
  0xa5   :  { %1849 = vmatpush3.bf16.msra.mxu0 %v2006_v32 }
  0xa6   :  { %1850 = vmatprep.subr.bf16.mxu0 %v2032_v37 }
  0xa9   :  { %1851 = vmatpush3.bf16.msra.mxu0 %v2007_v33 }
  0xf5   :  { %v1652_v34 = vpop.f32.mrb[0].mxu1 }
  0xf6   :  { %v1653_v35 = vpop.f32.mrb[1].mxu1 }
  0xf7   :  { %v1654_v36 = vadd.f32 %v1653_v35, %v1652_v34  ;;  %v1655_v38 = vpop.f32.mrb[2].mxu1 }
  0xf8   :  { %v1656_v39 = vpop.f32.mrb[3].mxu1 }
  0xf9   :  { %v1657_v40 = vadd.f32 %v1656_v39, %v1655_v38 }
  0xfa   :  { %v1708_v47 = vpop.f32.mrb[0].mxu0 }
  0xfb   :  { %v1709_v48 = vpop.f32.mrb[1].mxu0 }
  0xfc   :  { %v1710_v49 = vadd.f32 %v1709_v48, %v1708_v47  ;;  %v1711_v50 = vpop.f32.mrb[2].mxu0 }
  0xfd   :  { %v1658_v41 = vpop.f32.mrb[4].mxu1  ;;  %v1712_v51 = vpop.f32.mrb[3].mxu0 }
  0xfe   :  { %v1659_v42 = vpop.f32.mrb[5].mxu1  ;;  %v1713_v52 = vadd.f32 %v1712_v51, %v1711_v50 }
  0xff   :  { %v1660_v43 = vadd.f32 %v1659_v42, %v1658_v41  ;;  %v1661_v44 = vpop.f32.mrb[6].mxu1 }
 0x100   :  { %v1662_v45 = vpop.f32.mrb[7].mxu1 }
 0x101   :  { %v1663_v46 = vadd.f32 %v1662_v45, %v1661_v44 }
 0x102   :  { %v1714_v59 = vpop.f32.mrb[4].mxu0 }
 0x103   :  { %v1715_v60 = vpop.f32.mrb[5].mxu0 }
 0x104   :  { %v1716_v63 = vadd.f32 %v1715_v60, %v1714_v59  ;;  %v1717_v1 = vpop.f32.mrb[6].mxu0 }
 0x105   :  { %v1718_v4 = vpop.f32.mrb[7].mxu0 }
 0x106   :  { %v1719_v7 = vadd.f32 %v1718_v4, %v1717_v1 }
 0x115   :  { %v1680_v37 = vpop.f32.mrb[8].mxu1 }
 0x116   :  { %v1681_v53 = vpop.f32.mrb[9].mxu1 }
 0x117   :  { %v1682_v54 = vadd.f32 %v1681_v53, %v1680_v37  ;;  %v1683_v55 = vpop.f32.mrb[10].mxu1 }
 0x118   :  { %v1684_v56 = vpop.f32.mrb[11].mxu1 }
 0x119   :  { %v860_v57 = vadd.f32 %v1682_v54, %v1654_v36  ;;  %v1685_v58 = vadd.f32 %v1684_v56, %v1683_v55 }
 0x11a   :  { %v1764_v20 = vpop.f32.mrb[8].mxu0 }
 0x11b   :  { %v909_v61 = vadd.f32 %v1710_v49, %v860_v57  ;;  %v863_v62 = vadd.f32 %v1685_v58, %v1657_v40  ;;  %v1765_v21 = vpop.f32.mrb[9].mxu0 }
 0x11c   :  { %v1766_v22 = vadd.f32 %v1765_v21, %v1764_v20  ;;  %v1767_v23 = vpop.f32.mrb[10].mxu0 }
 0x11d   :  { %v912_v5 = vadd.f32 %v1713_v52, %v863_v62  ;;  %v1686_v6 = vpop.f32.mrb[12].mxu1  ;;  %v1768_v24 = vpop.f32.mrb[11].mxu0 }
 0x11e   :  { %v1687_v8 = vpop.f32.mrb[13].mxu1  ;;  %v1769_v25 = vadd.f32 %v1768_v24, %v1767_v23 }
 0x11f   :  { %v1688_v9 = vadd.f32 %v1687_v8, %v1686_v6  ;;  %v1689_v10 = vpop.f32.mrb[14].mxu1 }
 0x120   :  { %v1690_v11 = vpop.f32.mrb[15].mxu1 }
 0x121   :  { %v868_v12 = vadd.f32 %v1688_v9, %v1660_v43  ;;  %v1691_v13 = vadd.f32 %v1690_v11, %v1689_v10 }
 0x122   :  { %v1770_v31 = vpop.f32.mrb[12].mxu0 }
 0x123   :  { %v871_v14 = vadd.f32 %v1691_v13, %v1663_v46  ;;  %v917_v18 = vadd.f32 %v1716_v63, %v868_v12  ;;  %v1771_v34 = vpop.f32.mrb[13].mxu0 }
 0x124   :  { %v1772_v35 = vadd.f32 %v1771_v34, %v1770_v31  ;;  %v1773_v36 = vpop.f32.mrb[14].mxu0 }
 0x125   :  { %v920_v19 = vadd.f32 %v1719_v7, %v871_v14  ;;  %v1774_v40 = vpop.f32.mrb[15].mxu0 }
 0x126   :  { %v1775_v41 = vadd.f32 %v1774_v40, %v1773_v36 }
 0x135   :  { %v1736_v26 = vpop.f32.mrb[16].mxu1 }
 0x136   :  { %v1737_v27 = vpop.f32.mrb[17].mxu1 }
 0x137   :  { %v1738_v28 = vadd.f32 %v1737_v27, %v1736_v26  ;;  %v1739_v29 = vpop.f32.mrb[18].mxu1 }
 0x138   :  { %v1740_v30 = vpop.f32.mrb[19].mxu1 }
 0x139   :  { %v958_v32 = vadd.f32 %v1738_v28, %v909_v61  ;;  %v1741_v33 = vadd.f32 %v1740_v30, %v1739_v29 }
 0x13b   :  { %v1007_v38 = vadd.f32 %v1766_v22, %v958_v32  ;;  %v961_v39 = vadd.f32 %v1741_v33, %v912_v5 }
 0x13d   :  { %v1056_v42 = vsel %vm2407_vm7, %v1007_v38, -1e+30  ;;  %v1010_v43 = vadd.f32 %v1769_v25, %v961_v39  ;;  %v1742_v44 = vpop.f32.mrb[20].mxu1 }
 0x13e   :  { %v1743_v45 = vpop.f32.mrb[21].mxu1 }
 0x13f   :  { %v1057_v46 = vsel %vm1053_vm11, %v1010_v43, -1e+30  ;;  %v1744_v47 = vadd.f32 %v1743_v45, %v1742_v44  ;;  %v1745_v48 = vpop.f32.mrb[22].mxu1 }
 0x140   :  { %v1060_v49 = vmax.f32 %v1056_v42, %v1057_v46  ;;  %v1746_v50 = vpop.f32.mrb[23].mxu1 }
 0x141   :  { %v966_v51 = vadd.f32 %v1744_v47, %v917_v18  ;;  %v1747_v52 = vadd.f32 %v1746_v50, %v1745_v48 }
 0x142   :  { %v1061_v37 = vrot.slane %v1060_v49, 4 }
 0x143   :  { %v1015_v53 = vadd.f32 %v1772_v35, %v966_v51  ;;  %v969_v54 = vadd.f32 %v1747_v52, %v920_v19 }
 0x144   :  { %v1062_v0 = vmax.f32 %v1060_v49, %v1061_v37 }
 0x145   :  { %v1058_v55 = vsel %vm2445_vm12, %v1015_v53, -1e+30  ;;  %v1018_v56 = vadd.f32 %v1775_v41, %v969_v54 }
 0x146   :  { %v1063_v57 = vrot.slane %v1062_v0, 2 }
 0x147   :  { %v1059_v2 = vsel %vm1055_vm15, %v1018_v56, -1e+30 }
 0x148   :  { %v1064_v3 = vmax.f32 %v1062_v0, %v1063_v57  ;;  %v1067_v58 = vmax.f32 %v1058_v55, %v1059_v2 }
 0x14a   :  { %v1068_v59 = vrot.slane %v1067_v58, 4  ;;  %v1065_v60 = vrot.slane %v1064_v3, 1 }
 0x14c   :  { %v1069_v61 = vmax.f32 %v1067_v58, %v1068_v59  ;;  %v1066_v1 = vmax.f32 %v1064_v3, %v1065_v60 }
 0x14e   :  { %v1070_v62 = vrot.slane %v1069_v61, 2  ;;  %v1138_v15 = vpack.c.bf16 %v1066_v1, %v1066_v1 }
 0x150   :  { %v1071_v63 = vmax.f32 %v1069_v61, %v1070_v62  ;;  %v1394_v7 = vunpack.c.l.b16 %v1138_v15 }
 0x152   :  { %v1072_v4 = vrot.slane %v1071_v63, 1 }
 0x154   :  { %v1073_v5 = vmax.f32 %v1071_v63, %v1072_v4 }
 0x156   :  { %v1139_v6 = vpack.c.bf16 %v1073_v5, %v1073_v5 }
 0x158   :  { %v1395_v8 = vunpack.c.l.b16 %v1139_v6 }
 0x15a   :  { %v1397_v16 = vsel %vm1396_vm0, %v1395_v8, %v1394_v7 }
 0x15b   :  { %v1398_v9 = vpack.c.b16 %v1397_v16, %v1397_v16 }
 0x15d   :  { %1853 = vmatmul.mubr.bf16.vlgmr.msra.gmra.mrb[16].mxu0 %v1398_v9 }
 0x161   :  { %v1792_v17 = vpop.f32.mrb[24].mxu1 }
 0x162   :  { %v1793_v10 = vpop.f32.mrb[25].mxu1 }
 0x163   :  { %v1794_v11 = vadd.f32 %v1793_v10, %v1792_v17  ;;  %v1795_v12 = vpop.f32.mrb[26].mxu1 }
 0x164   :  { %v1796_v13 = vpop.f32.mrb[27].mxu1 }
 0x230   :  { %v1482_v14 = vpop.f32.mrb[16].mxu0 }
 0x231   :  { %v1856_v18 = vadd.f32 %v1794_v11, %v1482_v14  ;;  %v1854_v19 = vpop.f32.mrb[17].mxu0 }
 0x232   :  { %v1485_v20 = vpop.f32.mrb[18].mxu0 }
 0x233   :  { %1488 = vst [vmem:[#allocation2] sm:$0x3] %v1856_v18  ;;  %v1855_v21 = vpop.f32.mrb[19].mxu0 }
 0x234   :  { %2019 = shalt.err (!%p2016_p4)
}
 0x235   :  { %s2020_s7 = scalar_lea.hbm %s2539_s3, 32 }
 0x236   :  { %p2021_p5 = scmp.ne.s32.totalorder %s2539_s3, %s2020_s7  ;;  %p2024_p6 = scmp.lt.u32.totalorder %s2020_s7, %s2539_s3 }
 0x238   :  { %p2026_p7 = pnand %p2024_p6, %p2021_p5 }
 0x23a   :  { %2029 = shalt.err (!%p2026_p7)
}
 0x23b   :  { %1498 = dma.vmem_to_hbm [thread:$0]  %s1496_s30, 32, %s2539_s3, [#allocation3]  }
 0x23c   :  { %2030 = dma.done.wait [#allocation3], 32  }
 0x23d   :  { %2031 = vsyncadd [#allocation3], 4294967264 }
 0x23e   :  { %1502 = vsyncpa [#allocation3], 1 }

</bundles_post_ra>
